<compile_context>
chip_gen: v6e
topology: v6e:2x2x1
jax: 0.10.0
libtpu: 0.0.40
codegen_flags: <defaults>
</compile_context>

<pallas_src>
import functools

import jax
import jax.numpy as jnp
from jax.experimental import pallas as pl
from jax.experimental.pallas import tpu as pltpu


def _round_up(x: int, m: int) -> int:
    return (x + m - 1) // m * m


def _cdiv(a: int, b: int) -> int:
    return -(-a // b)


def _vmem_limit_bytes() -> int:
    """75% of this generation's per-core VMEM (v5e/v6e: ~96 MiB, v7x: ~48 MiB)."""
    try:
        cap = pltpu.get_tpu_info().vmem_capacity_bytes
    except Exception:
        cap = 64 * 1024 * 1024   # conservative (v7x-sized) fallback
    return int(cap) * 3 // 4


def linear_kernel(x_ref, w_ref, b_ref, o_ref):
    # (TB, D) @ (D, TN) on the MXU with f32 accumulation; bias add on the VPU.
    # The (optional) bf16 cast of the activations happens here, in-kernel (VPU),
    # instead of as a separate un-overlapped XLA pass in the wrapper.
    x = x_ref[...].astype(w_ref.dtype)
    acc = jnp.dot(x, w_ref[...], preferred_element_type=jnp.float32)
    o_ref[...] = (acc + b_ref[...]).astype(o_ref.dtype)


def init_params(key, input_dim, num_classes, dtype=jnp.float32):
    """Mimic PyTorch nn.Linear default init: uniform(-1/sqrt(fan_in), 1/sqrt(fan_in)).
    Weight stored transposed vs torch: (input_dim, num_classes)."""
    kw, kb = jax.random.split(key)
    lim = 1.0 / jnp.sqrt(jnp.float32(input_dim))
    w = jax.random.uniform(kw, (input_dim, num_classes), dtype, -lim, lim)
    b = jax.random.uniform(kb, (num_classes,), dtype, -lim, lim)
    return w, b


def prepare_params(w, b, *, compute_dtype=jnp.float32):
    """Pad (num_classes -> multiple of 128, lane-dense) and cast the parameters ONCE.

    w: (input_dim, num_classes)  -- transposed vs torch.nn.Linear.weight
    b: (num_classes,)
    compute_dtype: jnp.float32 (PyTorch-exact) or jnp.bfloat16 (opt-in, faster MXU/DMA).
    """
    D, C = w.shape
    C_pad = _round_up(max(C, 1), 128)
    w_p = jnp.zeros((D, C_pad), compute_dtype).at[:, :C].set(w.astype(compute_dtype))
    b_p = jnp.zeros((1, C_pad), jnp.float32).at[0, :C].set(b.astype(jnp.float32))
    return w_p, b_p


@functools.partial(
    jax.jit, static_argnames=("num_classes", "block_b", "block_c", "use_pallas"))
def linear_classifier_forward(x, w_p, b_p, *, num_classes,
                              block_b: int = 512, block_c: int = 512,
                              use_pallas=None):
    """x: (B, input_dim); w_p: (input_dim, C_pad) pre-padded; b_p: (1, C_pad)."""
    B, D = x.shape
    D_w, C_pad = w_p.shape
    assert D == D_w and C_pad % 128 == 0 and num_classes <= C_pad

    # Tiny-problem fast path: fixed pallas_call / pipeline overhead would dominate.
    if use_pallas is None:
        use_pallas = B * D * C_pad >= (1 << 18)
    if not use_pallas:
        acc = jnp.dot(x.astype(w_p.dtype), w_p, preferred_element_type=jnp.float32)
        return (acc + b_p)[:, :num_classes].astype(x.dtype)

    x_item = x.dtype.itemsize
    w_item = w_p.dtype.itemsize
    out_item = x.dtype.itemsize

    vmem_limit = _vmem_limit_bytes()
    w_bytes = D * C_pad * w_item

    # Keep W fully VMEM-resident across the batch grid only if it fits a conservative
    # budget (counting the default double-buffering); otherwise stream it over a
    # second ("parallel") class axis in lane-dense (D, TN) slabs.
    # TODO(synk): pipeline_mode=pl.Buffered(1) on resident W/bias would halve their
    # footprint; the resident budget below conservatively assumes 2x instead.
    resident_budget = min(vmem_limit // 3, 32 * 1024 * 1024)
    tile_c = 2 * w_bytes > resident_budget
    if tile_c:
        tn = _round_up(min(block_c, C_pad), 128)
        while C_pad % tn:                      # largest 128-multiple dividing C_pad
            tn -= 128
    else:
        tn = C_pad

    # Batch tile: as large as the VMEM budget allows (amortizes per-step overhead),
    # rounded to the 8-sublane constraint.
    if tile_c:
        fixed = 2 * D * tn * w_item + 2 * tn * 4          # streamed W + bias slabs
    else:
        fixed = 2 * w_bytes + 2 * C_pad * 4               # resident W + bias
    per_row = 2 * D * x_item + 2 * tn * out_item          # double-buffered x + out
    avail = vmem_limit - fixed - (1 << 20)
    tb_cap = max(8, (avail // per_row) // 8 * 8) if avail > 8 * per_row else 8

    tb = min(_round_up(block_b, 8), _round_up(B, 8), tb_cap)
    # v7x megacore: keep >= 2 steps on the "parallel" batch axis when B allows it,
    # so both TensorCores get work (harmless on single-TC v5e/v6e).
    if B > 8 and _cdiv(B, tb) < 2:
        tb = max(8, _round_up(_cdiv(B, 2), 8))
    nb = _cdiv(B, tb)

    out_shape = jax.ShapeDtypeStruct((B, C_pad), x.dtype)

    if tile_c:
        nc = C_pad // tn
        grid = (nb, nc)
        in_specs = [
            pl.BlockSpec((tb, D), lambda i, j: (i, 0)),    # activations, streamed
            pl.BlockSpec((D, tn), lambda i, j: (0, j)),    # weight slab, streamed
            pl.BlockSpec((1, tn), lambda i, j: (0, j)),    # bias slab
        ]
        out_spec = pl.BlockSpec((tb, tn), lambda i, j: (i, j))
        dims = ("parallel", "parallel")
    else:
        grid = (nb,)
        in_specs = [
            pl.BlockSpec((tb, D), lambda i: (i, 0)),       # activations, streamed
            pl.BlockSpec((D, C_pad), lambda i: (0, 0)),    # W resident across batch
            pl.BlockSpec((1, C_pad), lambda i: (0, 0)),    # bias resident
        ]
        out_spec = pl.BlockSpec((tb, C_pad), lambda i: (i, 0))
        dims = ("parallel",)

    out_padded = pl.pallas_call(
        linear_kernel,
        out_shape=out_shape,
        grid=grid,
        in_specs=in_specs,
        out_specs=out_spec,
        compiler_params=pltpu.CompilerParams(
            dimension_semantics=dims,
            vmem_limit_bytes=vmem_limit,
        ),
    )(x, w_p, b_p)

    # Slice away the lane padding on the class dim (lane-dense stores in-kernel).
    return out_padded[:, :num_classes]


if __name__ == "__main__":
    key = jax.random.PRNGKey(0)
    kx, kp = jax.random.split(key)

    batch, input_dim, num_classes = 8, 32, 1

    x = jax.random.normal(kx, (batch, input_dim), dtype=jnp.float32)
    w, b = init_params(kp, input_dim, num_classes)
    ref = x @ w + b[None, :]

    # Default (f32) parameters: matches PyTorch nn.Linear numerics.
    w_p, b_p = prepare_params(w, b)
    out = linear_classifier_forward(x, w_p, b_p, num_classes=num_classes,
                                    use_pallas=True)
    out = jax.block_until_ready(out)
    assert out.shape == (batch, num_classes)
    assert jnp.allclose(out, ref, atol=2e-2, rtol=2e-2), "f32 path mismatch"

    # Opt-in bf16 MXU operands (f32 accumulation) for bandwidth-bound deployments.
    w_bf, b_bf = prepare_params(w, b, compute_dtype=jnp.bfloat16)
    out_bf = linear_classifier_forward(x, w_bf, b_bf, num_classes=num_classes,
                                       use_pallas=True)
    out_bf = jax.block_until_ready(out_bf)
    assert out_bf.shape == (batch, num_classes)
    assert jnp.allclose(out_bf, ref, atol=2e-2, rtol=2e-2), "bf16 path mismatch"

    print("KERNEL_OK")
</pallas_src>

<mosaic_0001>
module attributes {stable_mosaic.version = 11 : i64} {
  func.func @linear_kernel(%arg0: i32, %arg1: memref<8x32xf32, #tpu.memory_space<vmem>>, %arg2: memref<32x128xf32, #tpu.memory_space<vmem>>, %arg3: memref<1x128xf32, #tpu.memory_space<vmem>>, %arg4: memref<8x128xf32, #tpu.memory_space<vmem>>) attributes {dimension_semantics = [#tpu.dimension_semantics<parallel>], iteration_bounds = array<i64: 1>, scalar_prefetch = 0 : i64, scratch_operands = 0 : i64, tpu.core_type = #tpu.core_type<tc>, window_params = [{transform_indices = @transform_0, window_bounds = array<i64: 8, 32>}, {pipeline_mode = #tpu.pipeline_mode<synchronous>, transform_indices = @transform_1, window_bounds = array<i64: 32, 128>}, {pipeline_mode = #tpu.pipeline_mode<synchronous>, transform_indices = @transform_2, window_bounds = array<i64: 1, 128>}, {transform_indices = @transform_3, window_bounds = array<i64: 8, 128>}]} {
    %c0 = arith.constant 0 : index
    %c0_0 = arith.constant 0 : index
    %0 = vector.load %arg1[%c0, %c0_0] : memref<8x32xf32, #tpu.memory_space<vmem>>, vector<8x32xf32>
    %c0_1 = arith.constant 0 : index
    %c0_2 = arith.constant 0 : index
    %1 = vector.load %arg2[%c0_1, %c0_2] : memref<32x128xf32, #tpu.memory_space<vmem>>, vector<32x128xf32>
    %cst = arith.constant dense<0.000000e+00> : vector<8x128xf32>
    %2 = tpu.matmul %0, %1, %cst {dimension_numbers = #tpu.dot_dimension_numbers<[1], [0], [0], [1], [0, 0, 1, 1], [], []>} : vector<8x32xf32>, vector<32x128xf32>, vector<8x128xf32> -> vector<8x128xf32>
    %c0_3 = arith.constant 0 : index
    %c0_4 = arith.constant 0 : index
    %3 = vector.load %arg3[%c0_3, %c0_4] : memref<1x128xf32, #tpu.memory_space<vmem>>, vector<1x128xf32>
    %4 = vector.broadcast %3 : vector<1x128xf32> to vector<8x128xf32>
    %5 = arith.addf %2, %4 : vector<8x128xf32>
    %c0_5 = arith.constant 0 : index
    %c0_6 = arith.constant 0 : index
    %6 = vector.load %arg4[%c0_5, %c0_6] : memref<8x128xf32, #tpu.memory_space<vmem>>, vector<8x128xf32>
    tpu.vector_store %arg4[%c0_5, %c0_6], %5 {strides = array<i32>} : memref<8x128xf32, #tpu.memory_space<vmem>>, vector<8x128xf32>,
    return
  }
  func.func @transform_0(%arg0: i32) -> (i32, i32) {
    %c0_i32 = arith.constant 0 : i32
    %c0_i32_0 = arith.constant 0 : i32
    return %arg0, %c0_i32 : i32, i32
  }
  func.func @transform_1(%arg0: i32) -> (i32, i32) {
    %c0_i32 = arith.constant 0 : i32
    %c0_i32_0 = arith.constant 0 : i32
    %c0_i32_1 = arith.constant 0 : i32
    return %c0_i32, %c0_i32_0 : i32, i32
  }
  func.func @transform_2(%arg0: i32) -> (i32, i32) {
    %c0_i32 = arith.constant 0 : i32
    %c0_i32_0 = arith.constant 0 : i32
    %c0_i32_1 = arith.constant 0 : i32
    return %c0_i32, %c0_i32_0 : i32, i32
  }
  func.func @transform_3(%arg0: i32) -> (i32, i32) {
    %c0_i32 = arith.constant 0 : i32
    %c0_i32_0 = arith.constant 0 : i32
    return %arg0, %c0_i32 : i32, i32
  }
}

</mosaic_0001>

<bundles_post_ra>
// kernel: linear_classifier_forward.1
= control target key start
LH: loop header
LB: loop body
LE: loop exit
PB: predicated region body
PF: predicated region fallthrough
CT: control target
= control target key end

     0   :  { %8 = vsyncpa [#allocation3], 0  ;;  %s239_s0 = inlined_call_operand.hbm [shape: f32[8,32], index: 0, kind: input, shape index: {}]   ;;  %s240_s1 = inlined_call_operand.hbm [shape: f32[32,128], index: 1, kind: input, shape index: {}]   ;;  %s241_s2 = inlined_call_operand.vmem [shape: f32[1,128], index: 2, kind: input, shape index: {}]   ;;  %s242_s3 = inlined_call_operand.vmem [shape: f32[8,128], index: 3, kind: output, shape index: {}]  }
   0x1   :  { %9 = vsyncpa [#allocation5], 0  ;;  %s201_s12 = smov [#allocation2]   ;;  %s202_s14 = smov [#allocation4]  }
   0x2   :  { %s16_s13 = sshll.u32 %s201_s12, 4  ;;  %s25_s15 = sshll.u32 %s202_s14, 4  ;;  %s17_s13 = int_to_ptr.vmem [resolvable:$true] %s16_s13  ;;  %s26_s15 = int_to_ptr.vmem [resolvable:$true] %s25_s15 }
   0x3   :  { %s165_s16 = scalar_lea.vmem %s17_s13, 128  ;;  %p170_p1 = scmp.lt.s32.totalorder %s17_s13, %s17_s13 }
   0x4   :  { %p166_p0 = scmp.ne.s32.totalorder %s17_s13, %s165_s16  ;;  %p171_p2 = scmp.lt.s32.totalorder %s165_s16, %s165_s16 }
   0x6   :  { %p172_p3 = por %p171_p2, %p170_p1 }
   0x8   :  { %p173_p4 = pnand %p172_p3, %p166_p0 }
   0xa   :  { %176 = shalt.err (!%p173_p4)
}
   0xb   :  { %19 = dma.hbm_to_vmem [thread:$0]  %s239_s0, 128, %s17_s13, [#allocation3]  }
   0xc   :  { %s185_s19 = scalar_lea.vmem %s26_s15, 512  ;;  %p190_p6 = scmp.lt.s32.totalorder %s26_s15, %s26_s15 }
   0xd   :  { %p186_p5 = scmp.ne.s32.totalorder %s26_s15, %s185_s19  ;;  %p191_p7 = scmp.lt.s32.totalorder %s185_s19, %s185_s19 }
   0xf   :  { %p192_p8 = por %p191_p7, %p190_p6 }
  0x11   :  { %p193_p9 = pnand %p192_p8, %p186_p5 }
  0x13   :  { %196 = shalt.err (!%p193_p9)
}
  0x14   :  { %s203_s20 = smov 128   ;;  %s204_s21 = smov 8  }
  0x15   :  { %31 = dma.hbm_to_vmem [thread:$0]  %s240_s1, 512, %s26_s15, [#allocation5], %s203_s20, %s203_s20, %s204_s21  }
  0x16   :  { %197 = dma.done.wait [#allocation3], 128  }
  0x17   :  { %198 = vsyncadd [#allocation3], 4294967168 }
  0x18   :  { %199 = dma.done.wait [#allocation5], 512  }
  0x19   :  { %200 = vsyncadd [#allocation5], 4294966784  ;;  %v205_v0 = vmov 0.0   ;;  %vm206_vm0 = vmmov 0   ;;  %v44_v1 = vld [vmem:[#allocation4 + $0x18] sm:$0xff]  ;;  %v43_v2 = vld [vmem:[#allocation4 + $0x10] sm:$0xff] }
  0x1a   :  { %140 = vmatprep.subr.mxu0 %v205_v0  ;;  %148 = vmatprep.mubr.msk.f32.mxu0 %vm206_vm0, %v205_v0  ;;  %v42_v3 = vld [vmem:[#allocation4 + $0x8] sm:$0xff]  ;;  %v41_v4 = vld [vmem:[#allocation4] sm:$0xff]  ;;  %v40_v5 = vld [vmem:[#allocation2] sm:$0xff]  ;;  %vm52_vm1 = vcmask 261120  }
  0x1b   :  { %141 = vmatpush3.msra.mxu0 %v44_v1  ;;  %v133_v6 = vld [vmem:[%s241_s2] ss:$0 sm:$0xff] }
  0x1c   :  { %142 = vmatprep.subr.mxu0 %v205_v0 }
  0x1d   :  { %143 = vmatpush3.msra.mxu0 %v43_v2 }
  0x1e   :  { %144 = vmatprep.subr.mxu0 %v205_v0 }
  0x1f   :  { %145 = vmatpush3.msra.mxu0 %v42_v3 }
  0x20   :  { %146 = vmatprep.subr.mxu0 %v205_v0 }
  0x21   :  { %147 = vmatpush3.msra.mxu0 %v41_v4 }
  0x22   :  { %149 = vmatmul.mubr.msk.f32.vlgmr.msra.gmra.mxu0 %vm52_vm1, %v40_v5 }
  0xe2   :  { %v122_v7 = vpop.f32.mrf.mxu0 }
  0xe3   :  { %v123_v8 = vadd.f32 %v133_v6, %v122_v7 }
  0xe4   :  { %v150_v9 = vpop.f32.mrf.mxu0 }
  0xe5   :  { %126 = vst [vmem:[%s242_s3] sm:$0xff] %v123_v8 }
  0xe6   :  { %131 = vsyncpa [#allocation3], 1 }
  0xe7   :  { %132 = vsyncpa [#allocation5], 1 }

</bundles_post_ra>
